<compile_context>
chip_gen: v6e
topology: v6e:2x2x1
jax: 0.10.0
libtpu: 0.0.40
codegen_flags: <defaults>
</compile_context>

<pallas_src>
import functools

import jax
import jax.numpy as jnp
import numpy as np
from jax.experimental import pallas as pl
from jax.experimental.pallas import tpu as pltpu


def _split3_bf16(v):
    """Exact 3-way bf16 decomposition: v == v0 + v1 + v2 (each term bf16-exact)."""
    v0 = v.astype(jnp.bfloat16)
    r1 = v - v0.astype(jnp.float32)
    v1 = r1.astype(jnp.bfloat16)
    v2 = (r1 - v1.astype(jnp.float32)).astype(jnp.bfloat16)
    return v0, v1, v2


def _nn_gather(v, m_bf16):
    """Nearest-neighbour gather (rows, F_in) -> (rows, F_out) via one-hot MXU matmul.

    Exact: each bf16 split term is gathered exactly (one-hot columns, f32 acc),
    and the three partial results recombine to the original f32 values.
    """
    v0, v1, v2 = _split3_bf16(v)
    acc = jnp.dot(v0, m_bf16, preferred_element_type=jnp.float32)
    acc = acc + jnp.dot(v1, m_bf16, preferred_element_type=jnp.float32)
    acc = acc + jnp.dot(v2, m_bf16, preferred_element_type=jnp.float32)
    return acc


def _upsample_fourier_kernel(x_ref, m_ref, p_ref, o_ref):
    """Fused nearest-neighbour upsample + complex multiply-add, natural layout.

    Block shapes:
      x_ref : (1, 2, TG, F_in)   -- [re, im] planes, TG row-groups of x
      m_ref : (F_in, F_out)      -- 0/1 one-hot nearest-neighbour gather matrix
      p_ref : (4, TG, F_out)     -- [wr, wi, br, bi], natural flat layout
      o_ref : (1, 2, TG, F_out)  -- [re, im] output, natural flat layout
    """
    m = m_ref[...]                                   # (F_in, F_out) bf16 one-hot
    up_r = _nn_gather(x_ref[0, 0], m)                # (TG, F_out) f32
    up_i = _nn_gather(x_ref[0, 1], m)
    wr = p_ref[0]
    wi = p_ref[1]
    br = p_ref[2]
    bi = p_ref[3]
    # (up_r + i*up_i) * (wr + i*wi) + (br + i*bi)
    o_ref[0, 0] = up_r * wr - up_i * wi + br
    o_ref[0, 1] = up_r * wi + up_i * wr + bi


def upsampling_forward(x, weight, bias, scale_factor=2):
    """x: complex64 (B, C, H, W); weight/bias: complex64 (C, H*s, W*s)."""
    B, C, H, W = x.shape
    s = int(scale_factor)
    Hs, Ws = H * s, W * s
    assert weight.shape == (C, Hs, Ws)
    assert bias.shape == (C, Hs, Ws)

    # ---- row-group size nh (nh | H): nh input rows -> nh*s output rows ------
    # F_in = nh*W flat x values map onto F_out = s*s*F_in flat output values of
    # the SAME group index, so natural row-major reshapes line all arrays up.
    # Keep F_in minimal subject to F_out being a multiple of 128 (lane-dense
    # output stores) so the one-hot gather matmul stays negligible.
    divs = [d for d in range(1, H + 1) if H % d == 0]
    nh = next((d for d in divs if (s * s * d * W) % 128 == 0), None)
    if nh is None:
        # TODO(synk): zero-pad W (and slice the output) instead of accepting a
        # sub-128 / unaligned lane dim when H has no suitable divisor.
        nh = next((d for d in divs if s * s * d * W >= 128), H)

    F_in = nh * W                 # flat x elements per group
    F_out = s * s * F_in          # flat out/weight/bias elements per group
    n_groups = C * H // nh        # == C * Hs // (nh * s)

    # ---- VMEM-budgeted group tile TG (v7x has only 64 MiB physical VMEM) ----
    def _round_up(v, m):
        return (v + m - 1) // m * m

    fin_pad = _round_up(F_in, 128)
    fout_pad = _round_up(F_out, 128)
    bytes_per_group = 4 * (2 * fin_pad + (4 + 2) * fout_pad)   # x + params + out
    budget = 16 * 1024 * 1024                                  # dbl-buffered target
    tg_cap = max(1, budget // (2 * bytes_per_group))
    if n_groups <= tg_cap:
        tg = n_groups
    else:
        cands = [d for d in range(8, int(tg_cap) + 1, 8) if n_groups % d == 0]
        tg = max(cands) if cands else n_groups
        # TODO(synk): pad n_groups so a budget-sized multiple-of-8 tile always exists.
    grid_g = n_groups // tg

    resident = 2 * _round_up(tg, 8) * bytes_per_group + 2 * 2 * fin_pad * fout_pad
    vmem_limit = int(max(32 * 1024 * 1024, min(2 * resident, 60 * 1024 * 1024)))

    # ---- mandatory complex -> f32-plane conversions (fused elementwise, no
    #      transposes; the reshapes below are pure bitcasts) -------------------
    x_planes = jnp.stack([jnp.real(x), jnp.imag(x)], axis=1).astype(jnp.float32)
    x_flat = x_planes.reshape(B, 2, n_groups, F_in)

    # NOTE: weight/bias are static parameters; in a real model this split would
    # be cached / done once at load time rather than per call.
    params = jnp.stack(
        [jnp.real(weight), jnp.imag(weight), jnp.real(bias), jnp.imag(bias)],
        axis=0,
    ).astype(jnp.float32).reshape(4, n_groups, F_out)

    # ---- static one-hot nearest-neighbour gather matrix ---------------------
    j = np.arange(F_out)
    src = (j // Ws // s) * W + (j % Ws) // s             # source flat index per out lane
    m_np = (np.arange(F_in)[:, None] == src[None, :]).astype(np.float32)
    m_mat = jnp.asarray(m_np, dtype=jnp.bfloat16)        # 0/1 exact in bf16

    # ---- pallas_call ---------------------------------------------------------
    x_spec = pl.BlockSpec((1, 2, tg, F_in), lambda g, b: (b, 0, g, 0))
    m_spec = pl.BlockSpec((F_in, F_out), lambda g, b: (0, 0))
    p_spec = pl.BlockSpec((4, tg, F_out), lambda g, b: (0, g, 0))
    o_spec = pl.BlockSpec((1, 2, tg, F_out), lambda g, b: (b, 0, g, 0))

    out = pl.pallas_call(
        _upsample_fourier_kernel,
        out_shape=jax.ShapeDtypeStruct((B, 2, n_groups, F_out), jnp.float32),
        grid_spec=pltpu.PrefetchScalarGridSpec(
            num_scalar_prefetch=0,
            grid=(grid_g, B),                 # group tiles outer, batch inner:
            in_specs=[x_spec, m_spec, p_spec],  # param / gather-matrix block
            out_specs=o_spec,                 # indices are constant across the
        ),                                    # batch sweep -> re-DMA elided.
        compiler_params=pltpu.CompilerParams(
            dimension_semantics=("parallel", "arbitrary"),
            vmem_limit_bytes=vmem_limit,
        ),
    )(x_flat, m_mat, params)

    # ---- back to complex64 (B, C, Hs, Ws): free reshape + fused complex pack
    # TODO(synk): JAX has no complex<->float bitcast, so this (and the input
    # plane split) is the one remaining, mandatory elementwise pass.
    out = out.reshape(B, 2, C, Hs, Ws)
    return jax.lax.complex(out[:, 0], out[:, 1])


def _reference(x, weight, bias, scale_factor=2):
    # plain-JAX reference: nearest upsample + elementwise complex mul + bias
    up = jnp.repeat(jnp.repeat(x, scale_factor, axis=-2), scale_factor, axis=-1)
    return up * weight[None] + bias[None]


if __name__ == "__main__":
    B, C, H, W = 2, 4, 16, 16
    scale = 2
    Ho, Wo = H * scale, W * scale

    key = jax.random.PRNGKey(0)
    kxr, kxi, kwr, kwi, kbr, kbi = jax.random.split(key, 6)

    # input: complex64, NCHW
    x = jax.lax.complex(
        jax.random.normal(kxr, (B, C, H, W), dtype=jnp.float32),
        jax.random.normal(kxi, (B, C, H, W), dtype=jnp.float32),
    )

    # deterministic parameter init (shapes from _FourierConv(channels, Ho, Wo))
    weight = jax.lax.complex(
        0.1 * jax.random.normal(kwr, (C, Ho, Wo), dtype=jnp.float32),
        0.1 * jax.random.normal(kwi, (C, Ho, Wo), dtype=jnp.float32),
    )
    bias = jax.lax.complex(
        0.01 * jax.random.normal(kbr, (C, Ho, Wo), dtype=jnp.float32),
        0.01 * jax.random.normal(kbi, (C, Ho, Wo), dtype=jnp.float32),
    )

    fwd = jax.jit(functools.partial(upsampling_forward, scale_factor=scale))
    out = jax.block_until_ready(fwd(x, weight, bias))

    ref = _reference(x, weight, bias, scale_factor=scale)
    assert out.shape == (B, C, Ho, Wo) and out.dtype == jnp.complex64
    assert jnp.allclose(out, ref, atol=1e-5, rtol=1e-5)

    print("KERNEL_OK")
</pallas_src>

<mosaic_0001>
module attributes {stable_mosaic.version = 11 : i64} {
  func.func @_upsample_fourier_kernel(%arg0: i32, %arg1: i32, %arg2: memref<1x2x32x32xf32, #tpu.memory_space<vmem>>, %arg3: memref<32x128xbf16, #tpu.memory_space<vmem>>, %arg4: memref<4x32x128xf32, #tpu.memory_space<vmem>>, %arg5: memref<1x2x32x128xf32, #tpu.memory_space<vmem>>) attributes {dimension_semantics = [#tpu.dimension_semantics<parallel>, #tpu.dimension_semantics<arbitrary>], iteration_bounds = array<i64: 1, 2>, scalar_prefetch = 0 : i64, scratch_operands = 0 : i64, tpu.core_type = #tpu.core_type<tc>, window_params = [{transform_indices = @transform_0, window_bounds = array<i64: 1, 2, 32, 32>}, {pipeline_mode = #tpu.pipeline_mode<synchronous>, transform_indices = @transform_1, window_bounds = array<i64: 32, 128>}, {transform_indices = @transform_2, window_bounds = array<i64: 4, 32, 128>}, {transform_indices = @transform_3, window_bounds = array<i64: 1, 2, 32, 128>}]} {
    %c0 = arith.constant 0 : index
    %c0_0 = arith.constant 0 : index
    %0 = vector.load %arg3[%c0, %c0_0] : memref<32x128xbf16, #tpu.memory_space<vmem>>, vector<32x128xbf16>
    %c0_1 = arith.constant 0 : index
    %c0_2 = arith.constant 0 : index
    %c0_3 = arith.constant 0 : index
    %c0_4 = arith.constant 0 : index
    %1 = vector.load %arg2[%c0_1, %c0_2, %c0_3, %c0_4] : memref<1x2x32x32xf32, #tpu.memory_space<vmem>>, vector<1x1x32x32xf32>
    %2 = vector.shape_cast %1 : vector<1x1x32x32xf32> to vector<32x32xf32>
    %3 = arith.truncf %2 : vector<32x32xf32> to vector<32x32xbf16>
    %4 = arith.extf %3 : vector<32x32xbf16> to vector<32x32xf32>
    %5 = arith.subf %2, %4 : vector<32x32xf32>
    %6 = arith.truncf %5 : vector<32x32xf32> to vector<32x32xbf16>
    %7 = arith.extf %6 : vector<32x32xbf16> to vector<32x32xf32>
    %8 = arith.subf %5, %7 : vector<32x32xf32>
    %9 = arith.truncf %8 : vector<32x32xf32> to vector<32x32xbf16>
    %cst = arith.constant dense<0.000000e+00> : vector<32x128xf32>
    %10 = tpu.matmul %3, %0, %cst {dimension_numbers = #tpu.dot_dimension_numbers<[1], [0], [0], [1], [0, 0, 1, 1], [], []>} : vector<32x32xbf16>, vector<32x128xbf16>, vector<32x128xf32> -> vector<32x128xf32>
    %cst_5 = arith.constant dense<0.000000e+00> : vector<32x128xf32>
    %11 = tpu.matmul %6, %0, %cst_5 {dimension_numbers = #tpu.dot_dimension_numbers<[1], [0], [0], [1], [0, 0, 1, 1], [], []>} : vector<32x32xbf16>, vector<32x128xbf16>, vector<32x128xf32> -> vector<32x128xf32>
    %12 = arith.addf %10, %11 : vector<32x128xf32>
    %cst_6 = arith.constant dense<0.000000e+00> : vector<32x128xf32>
    %13 = tpu.matmul %9, %0, %cst_6 {dimension_numbers = #tpu.dot_dimension_numbers<[1], [0], [0], [1], [0, 0, 1, 1], [], []>} : vector<32x32xbf16>, vector<32x128xbf16>, vector<32x128xf32> -> vector<32x128xf32>
    %14 = arith.addf %12, %13 : vector<32x128xf32>
    %c0_7 = arith.constant 0 : index
    %c1 = arith.constant 1 : index
    %c0_8 = arith.constant 0 : index
    %c0_9 = arith.constant 0 : index
    %15 = vector.load %arg2[%c0_7, %c1, %c0_8, %c0_9] : memref<1x2x32x32xf32, #tpu.memory_space<vmem>>, vector<1x1x32x32xf32>
    %16 = vector.shape_cast %15 : vector<1x1x32x32xf32> to vector<32x32xf32>
    %17 = arith.truncf %16 : vector<32x32xf32> to vector<32x32xbf16>
    %18 = arith.extf %17 : vector<32x32xbf16> to vector<32x32xf32>
    %19 = arith.subf %16, %18 : vector<32x32xf32>
    %20 = arith.truncf %19 : vector<32x32xf32> to vector<32x32xbf16>
    %21 = arith.extf %20 : vector<32x32xbf16> to vector<32x32xf32>
    %22 = arith.subf %19, %21 : vector<32x32xf32>
    %23 = arith.truncf %22 : vector<32x32xf32> to vector<32x32xbf16>
    %cst_10 = arith.constant dense<0.000000e+00> : vector<32x128xf32>
    %24 = tpu.matmul %17, %0, %cst_10 {dimension_numbers = #tpu.dot_dimension_numbers<[1], [0], [0], [1], [0, 0, 1, 1], [], []>} : vector<32x32xbf16>, vector<32x128xbf16>, vector<32x128xf32> -> vector<32x128xf32>
    %cst_11 = arith.constant dense<0.000000e+00> : vector<32x128xf32>
    %25 = tpu.matmul %20, %0, %cst_11 {dimension_numbers = #tpu.dot_dimension_numbers<[1], [0], [0], [1], [0, 0, 1, 1], [], []>} : vector<32x32xbf16>, vector<32x128xbf16>, vector<32x128xf32> -> vector<32x128xf32>
    %26 = arith.addf %24, %25 : vector<32x128xf32>
    %cst_12 = arith.constant dense<0.000000e+00> : vector<32x128xf32>
    %27 = tpu.matmul %23, %0, %cst_12 {dimension_numbers = #tpu.dot_dimension_numbers<[1], [0], [0], [1], [0, 0, 1, 1], [], []>} : vector<32x32xbf16>, vector<32x128xbf16>, vector<32x128xf32> -> vector<32x128xf32>
    %28 = arith.addf %26, %27 : vector<32x128xf32>
    %c0_13 = arith.constant 0 : index
    %c0_14 = arith.constant 0 : index
    %c0_15 = arith.constant 0 : index
    %29 = vector.load %arg4[%c0_13, %c0_14, %c0_15] : memref<4x32x128xf32, #tpu.memory_space<vmem>>, vector<1x32x128xf32>
    %30 = vector.shape_cast %29 : vector<1x32x128xf32> to vector<32x128xf32>
    %c1_16 = arith.constant 1 : index
    %c0_17 = arith.constant 0 : index
    %c0_18 = arith.constant 0 : index
    %31 = vector.load %arg4[%c1_16, %c0_17, %c0_18] : memref<4x32x128xf32, #tpu.memory_space<vmem>>, vector<1x32x128xf32>
    %32 = vector.shape_cast %31 : vector<1x32x128xf32> to vector<32x128xf32>
    %c2 = arith.constant 2 : index
    %c0_19 = arith.constant 0 : index
    %c0_20 = arith.constant 0 : index
    %33 = vector.load %arg4[%c2, %c0_19, %c0_20] : memref<4x32x128xf32, #tpu.memory_space<vmem>>, vector<1x32x128xf32>
    %34 = vector.shape_cast %33 : vector<1x32x128xf32> to vector<32x128xf32>
    %c3 = arith.constant 3 : index
    %c0_21 = arith.constant 0 : index
    %c0_22 = arith.constant 0 : index
    %35 = vector.load %arg4[%c3, %c0_21, %c0_22] : memref<4x32x128xf32, #tpu.memory_space<vmem>>, vector<1x32x128xf32>
    %36 = vector.shape_cast %35 : vector<1x32x128xf32> to vector<32x128xf32>
    %37 = arith.mulf %14, %30 : vector<32x128xf32>
    %38 = arith.mulf %28, %32 : vector<32x128xf32>
    %39 = arith.subf %37, %38 : vector<32x128xf32>
    %40 = arith.addf %39, %34 : vector<32x128xf32>
    %c0_23 = arith.constant 0 : index
    %c0_24 = arith.constant 0 : index
    %c0_25 = arith.constant 0 : index
    %c0_26 = arith.constant 0 : index
    %41 = vector.load %arg5[%c0_23, %c0_24, %c0_25, %c0_26] : memref<1x2x32x128xf32, #tpu.memory_space<vmem>>, vector<1x1x32x128xf32>
    %42 = vector.shape_cast %41 : vector<1x1x32x128xf32> to vector<32x128xf32>
    %43 = vector.shape_cast %40 : vector<32x128xf32> to vector<1x1x32x128xf32>
    tpu.vector_store %arg5[%c0_23, %c0_24, %c0_25, %c0_26], %43 {strides = array<i32>} : memref<1x2x32x128xf32, #tpu.memory_space<vmem>>, vector<1x1x32x128xf32>,
    %44 = arith.mulf %14, %32 : vector<32x128xf32>
    %45 = arith.mulf %28, %30 : vector<32x128xf32>
    %46 = arith.addf %44, %45 : vector<32x128xf32>
    %47 = arith.addf %46, %36 : vector<32x128xf32>
    %c0_27 = arith.constant 0 : index
    %c1_28 = arith.constant 1 : index
    %c0_29 = arith.constant 0 : index
    %c0_30 = arith.constant 0 : index
    %48 = vector.load %arg5[%c0_27, %c1_28, %c0_29, %c0_30] : memref<1x2x32x128xf32, #tpu.memory_space<vmem>>, vector<1x1x32x128xf32>
    %49 = vector.shape_cast %48 : vector<1x1x32x128xf32> to vector<32x128xf32>
    %50 = vector.shape_cast %47 : vector<32x128xf32> to vector<1x1x32x128xf32>
    tpu.vector_store %arg5[%c0_27, %c1_28, %c0_29, %c0_30], %50 {strides = array<i32>} : memref<1x2x32x128xf32, #tpu.memory_space<vmem>>, vector<1x1x32x128xf32>,
    return
  }
  func.func @transform_0(%arg0: i32, %arg1: i32) -> (i32, i32, i32, i32) {
    %c0_i32 = arith.constant 0 : i32
    %c0_i32_0 = arith.constant 0 : i32
    %c0_i32_1 = arith.constant 0 : i32
    return %arg1, %c0_i32, %arg0, %c0_i32_0 : i32, i32, i32, i32
  }
  func.func @transform_1(%arg0: i32, %arg1: i32) -> (i32, i32) {
    %c0_i32 = arith.constant 0 : i32
    %c0_i32_0 = arith.constant 0 : i32
    %c0_i32_1 = arith.constant 0 : i32
    return %c0_i32, %c0_i32_0 : i32, i32
  }
  func.func @transform_2(%arg0: i32, %arg1: i32) -> (i32, i32, i32) {
    %c0_i32 = arith.constant 0 : i32
    %c0_i32_0 = arith.constant 0 : i32
    %c0_i32_1 = arith.constant 0 : i32
    return %c0_i32, %arg0, %c0_i32_0 : i32, i32, i32
  }
  func.func @transform_3(%arg0: i32, %arg1: i32) -> (i32, i32, i32, i32) {
    %c0_i32 = arith.constant 0 : i32
    %c0_i32_0 = arith.constant 0 : i32
    %c0_i32_1 = arith.constant 0 : i32
    return %arg1, %c0_i32, %arg0, %c0_i32_0 : i32, i32, i32, i32
  }
}

</mosaic_0001>

<bundles_post_ra>
// kernel: custom-call.1
= control target key start
LH: loop header
LB: loop body
LE: loop exit
PB: predicated region body
PF: predicated region fallthrough
CT: control target
= control target key end

     0   :  { %s51_s0 = inlined_call_operand.hbm [shape: c64[2,4,16,16], index: 0, kind: input, shape index: {}]   ;;  %s52_s1 = inlined_call_operand.vmem [shape: f32[2,4,16,16], index: 1, kind: output, shape index: {}]  }
   0x1   :  { %s2_s8 = scalar_lea.hbm %s51_s0, 2048 }
   0x2   :  { %3 = vsyncpa [#allocation0], 0  ;;  %s4_s11 = sshll.u32 %s52_s1, 4  ;;  %s5_s11 = int_to_ptr.vmem [resolvable:$true] %s4_s11 }
   0x3   :  { %s20_s12 = scalar_lea.vmem %s5_s11, 2048  ;;  %p25_p1 = scmp.lt.s32.totalorder %s5_s11, %s5_s11 }
   0x4   :  { %p21_p0 = scmp.ne.s32.totalorder %s5_s11, %s20_s12  ;;  %p26_p2 = scmp.lt.s32.totalorder %s20_s12, %s20_s12 }
   0x6   :  { %p27_p3 = por %p26_p2, %p25_p1 }
   0x8   :  { %p28_p4 = pnand %p27_p3, %p21_p0 }
   0xa   :  { %31 = shalt.err (!%p28_p4)  }
   0xb   :  { %7 = dma.hbm_to_vmem [thread:$0]  %s2_s8, 2048, %s5_s11, [#allocation0] }
   0xc   :  { %33 = dma.done.wait [#allocation0], 2048  }
   0xd   :  { %34 = vsyncadd [#allocation0], 4294965248 }
   0xe   :  { %9 = vsyncpa [#allocation0], 1 }

// kernel: custom-call
= control target key start
LH: loop header
LB: loop body
LE: loop exit
PB: predicated region body
PF: predicated region fallthrough
CT: control target
= control target key end

     0   :  { %2 = vsyncpa [#allocation0], 0  ;;  %s47_s0 = inlined_call_operand.hbm [shape: c64[2,4,16,16], index: 0, kind: input, shape index: {}]   ;;  %s48_s1 = inlined_call_operand.vmem [shape: f32[2,4,16,16], index: 1, kind: output, shape index: {}]  }
   0x1   :  { %s3_s8 = sshll.u32 %s48_s1, 4  ;;  %s4_s8 = int_to_ptr.vmem [resolvable:$true] %s3_s8 }
   0x2   :  { %s17_s9 = scalar_lea.vmem %s4_s8, 2048  ;;  %p22_p1 = scmp.lt.s32.totalorder %s4_s8, %s4_s8 }
   0x3   :  { %p18_p0 = scmp.ne.s32.totalorder %s4_s8, %s17_s9  ;;  %p23_p2 = scmp.lt.s32.totalorder %s17_s9, %s17_s9 }
   0x5   :  { %p24_p3 = por %p23_p2, %p22_p1 }
   0x7   :  { %p25_p4 = pnand %p24_p3, %p18_p0 }
   0x9   :  { %28 = shalt.err (!%p25_p4)  }
   0xa   :  { %6 = dma.hbm_to_vmem [thread:$0]  %s47_s0, 2048, %s4_s8, [#allocation0] }
   0xb   :  { %29 = dma.done.wait [#allocation0], 2048  }
   0xc   :  { %30 = vsyncadd [#allocation0], 4294965248 }
   0xd   :  { %8 = vsyncpa [#allocation0], 1 }

// kernel: custom-call.3
= control target key start
LH: loop header
LB: loop body
LE: loop exit
PB: predicated region body
PF: predicated region fallthrough
CT: control target
= control target key end

     0   :  { %s51_s0 = inlined_call_operand.hbm [shape: c64[4,32,32], index: 0, kind: input, shape index: {}]   ;;  %s52_s1 = inlined_call_operand.vmem [shape: f32[4,32,32], index: 1, kind: output, shape index: {}]  }
   0x1   :  { %s2_s8 = scalar_lea.hbm %s51_s0, 2048 }
   0x2   :  { %3 = vsyncpa [#allocation0], 0  ;;  %s4_s11 = sshll.u32 %s52_s1, 4  ;;  %s5_s11 = int_to_ptr.vmem [resolvable:$true] %s4_s11 }
   0x3   :  { %s20_s12 = scalar_lea.vmem %s5_s11, 2048  ;;  %p25_p1 = scmp.lt.s32.totalorder %s5_s11, %s5_s11 }
   0x4   :  { %p21_p0 = scmp.ne.s32.totalorder %s5_s11, %s20_s12  ;;  %p26_p2 = scmp.lt.s32.totalorder %s20_s12, %s20_s12 }
   0x6   :  { %p27_p3 = por %p26_p2, %p25_p1 }
   0x8   :  { %p28_p4 = pnand %p27_p3, %p21_p0 }
   0xa   :  { %31 = shalt.err (!%p28_p4)  }
   0xb   :  { %7 = dma.hbm_to_vmem [thread:$0]  %s2_s8, 2048, %s5_s11, [#allocation0] }
   0xc   :  { %33 = dma.done.wait [#allocation0], 2048  }
   0xd   :  { %34 = vsyncadd [#allocation0], 4294965248 }
   0xe   :  { %9 = vsyncpa [#allocation0], 1 }

// kernel: custom-call.2
= control target key start
LH: loop header
LB: loop body
LE: loop exit
PB: predicated region body
PF: predicated region fallthrough
CT: control target
= control target key end

     0   :  { %2 = vsyncpa [#allocation0], 0  ;;  %s47_s0 = inlined_call_operand.hbm [shape: c64[4,32,32], index: 0, kind: input, shape index: {}]   ;;  %s48_s1 = inlined_call_operand.vmem [shape: f32[4,32,32], index: 1, kind: output, shape index: {}]  }
   0x1   :  { %s3_s8 = sshll.u32 %s48_s1, 4  ;;  %s4_s8 = int_to_ptr.vmem [resolvable:$true] %s3_s8 }
   0x2   :  { %s17_s9 = scalar_lea.vmem %s4_s8, 2048  ;;  %p22_p1 = scmp.lt.s32.totalorder %s4_s8, %s4_s8 }
   0x3   :  { %p18_p0 = scmp.ne.s32.totalorder %s4_s8, %s17_s9  ;;  %p23_p2 = scmp.lt.s32.totalorder %s17_s9, %s17_s9 }
   0x5   :  { %p24_p3 = por %p23_p2, %p22_p1 }
   0x7   :  { %p25_p4 = pnand %p24_p3, %p18_p0 }
   0x9   :  { %28 = shalt.err (!%p25_p4)  }
   0xa   :  { %6 = dma.hbm_to_vmem [thread:$0]  %s47_s0, 2048, %s4_s8, [#allocation0] }
   0xb   :  { %29 = dma.done.wait [#allocation0], 2048  }
   0xc   :  { %30 = vsyncadd [#allocation0], 4294965248 }
   0xd   :  { %8 = vsyncpa [#allocation0], 1 }

// kernel: custom-call.6
= control target key start
LH: loop header
LB: loop body
LE: loop exit
PB: predicated region body
PF: predicated region fallthrough
CT: control target
= control target key end

     0   :  { %s92_s0 = inlined_call_operand.vmem [shape: f32[2,4,32,32], index: 0, kind: input, shape index: {}]   ;;  %s93_s1 = inlined_call_operand.vmem [shape: f32[2,4,32,32], index: 1, kind: input, shape index: {}]   ;;  %s94_s2 = inlined_call_operand.hbm [shape: c64[2,4,32,32], index: 2, kind: output, shape index: {}]  }
   0x1   :  { %s3_s11 = scalar_lea.hbm %s94_s2, 4096 }
   0x2   :  { %4 = vsyncpa [#allocation0], 0  ;;  %s5_s14 = sshll.u32 %s92_s0, 4  ;;  %s6_s14 = int_to_ptr.vmem [resolvable:$true] %s5_s14 }
   0x3   :  { %s18_s15 = scalar_lea.vmem %s6_s14, 4096  ;;  %p23_p1 = scmp.lt.s32.totalorder %s6_s14, %s6_s14 }
   0x4   :  { %p19_p0 = scmp.ne.s32.totalorder %s6_s14, %s18_s15  ;;  %p24_p2 = scmp.lt.s32.totalorder %s18_s15, %s18_s15 }
   0x6   :  { %p25_p3 = por %p24_p2, %p23_p1 }
   0x8   :  { %p26_p4 = pnand %p25_p3, %p19_p0 }
   0xa   :  { %29 = shalt.err (!%p26_p4)  }
   0xb   :  { %8 = dma.vmem_to_hbm [thread:$0]  %s6_s14, 4096, %s94_s2, [#allocation0] }
   0xc   :  { %61 = dma.done.wait [#allocation0], 4096  }
   0xd   :  { %62 = vsyncadd [#allocation0], 4294963200 }
   0xe   :  { %10 = vsyncpa [#allocation0], 1 }
   0xf   :  { %11 = vsyncpa [#allocation1], 0  ;;  %s12_s0 = sshll.u32 %s93_s1, 4  ;;  %s13_s0 = int_to_ptr.vmem [resolvable:$true] %s12_s0 }
  0x10   :  { %s38_s20 = scalar_lea.vmem %s13_s0, 4096  ;;  %p43_p6 = scmp.lt.s32.totalorder %s13_s0, %s13_s0 }
  0x11   :  { %p39_p5 = scmp.ne.s32.totalorder %s13_s0, %s38_s20  ;;  %p44_p7 = scmp.lt.s32.totalorder %s38_s20, %s38_s20 }
  0x13   :  { %p45_p8 = por %p44_p7, %p43_p6 }
  0x15   :  { %p46_p9 = pnand %p45_p8, %p39_p5 }
  0x17   :  { %49 = shalt.err (!%p46_p9)  }
  0x18   :  { %15 = dma.vmem_to_hbm [thread:$0]  %s13_s0, 4096, %s3_s11, [#allocation1] }
  0x19   :  { %63 = dma.done.wait [#allocation1], 4096  }
  0x1a   :  { %64 = vsyncadd [#allocation1], 4294963200 }
  0x1b   :  { %17 = vsyncpa [#allocation1], 1 }

// kernel: upsampling_forward.1
= control target key start
LH: loop header
LB: loop body
LE: loop exit
PB: predicated region body
PF: predicated region fallthrough
CT: control target
= control target key end

     0   :  { %s993_s12 = smov 0   ;;  %s995_s13 = smov 0   ;;  %s1147_s0 = inlined_call_operand.vmem [shape: f32[2,2,32,32], index: 0, kind: input, shape index: {}]   ;;  %s1148_s1 = inlined_call_operand.vmem [shape: bf16[32,128], index: 1, kind: input, shape index: {}]   ;;  %s1149_s2 = inlined_call_operand.vmem [shape: f32[4,32,128], index: 2, kind: input, shape index: {}]   ;;  %s1150_s3 = inlined_call_operand.vmem [shape: f32[2,2,32,128], index: 3, kind: output, shape index: {}]  }
   0x1   :  { %s997_s14 = smov 0  }
   0x2 LB: > { %s22_s15 = sadd.s32 1, %s967_s13  ;;  %p808_p0 = scmp.ge.s32.totalorder %s971_s14, 1  ;;  %s971_s14 = sphi %s997_s14, %s13_s14   ;;  %s967_s13 = sphi %s995_s13, %s1152_s13   ;;  %s963_s12 = sphi %s993_s12, %s1151_s12  }
   0x3   : > { %p23_p1 = scmp.ge.s32.totalorder %s22_s15, 2  ;;  %p169_p2 = scmp.lt.s32.totalorder %s971_s14, 3 }
   0x5   : > { %s1154_s15 = smov (%p23_p1, %s22_s15), 0  ;;  %p170_p3 = pnand %p808_p0, %p169_p2 }
   0x6   : > { %p207_p4 = scmp.lt.s32.totalorder (!%p170_p3), %s963_s12, 1 }
   0x7   : > { %173 = sbr.rel (%p170_p3) target bundleno = 252 (0xfc), region = 32 }
   0xc   : > { %v1014_v0 = vld [vmem:[%s1148_s1 + $0x8] sm:$0xff]   ;;  %v1019_v1 = vld [vmem:[%s1148_s1] sm:$0xff]   ;;  %s1156_s12 = smov (!%p207_p4, %s963_s12), 1  ;;  %vm275_vm0 = vcmask 261120  }
   0xd   : > { %883 = vmatprep.subr.bf16.mxu1 %v1014_v0  ;;  %875 = vmatprep.subr.bf16.mxu0 %v1014_v0  ;;  %s849_s20 = sshll.u32 %s1156_s12, 6 }
   0xe   : > { %884 = vmatpush3.bf16.msra.mxu1 %v1014_v0  ;;  %876 = vmatpush3.bf16.msra.mxu0 %v1014_v0  ;;  %s214_s23 = scalar_lea.vmem %s1147_s0, %s849_s20  ;;  %s1107_s22 = scalar_lea.vmem %s1150_s3, %s849_s20 }
   0xf   : > { %885 = vmatprep.subr.bf16.mxu1 %v1019_v1  ;;  %877 = vmatprep.subr.bf16.mxu0 %v1019_v1  ;;  %v237_v2 = vld [vmem:[%s214_s23] sm:$0xff]  ;;  %v238_v3 = vld [vmem:[%s214_s23 + $0x8] sm:$0xff]  ;;  %v239_v4 = vld [vmem:[%s214_s23 + $0x10] sm:$0xff] }
  0x10   : > { %v241_v5 = vpack.c.bf16 %v238_v3, %v237_v2  ;;  %v240_v6 = vld [vmem:[%s214_s23 + $0x18] sm:$0xff]  ;;  %v821_v7 = vld [vmem:[%s214_s23 + $0x20] sm:$0xff]  ;;  %v822_v8 = vld [vmem:[%s214_s23 + $0x28] sm:$0xff] }
  0x11   : > { %v242_v9 = vpack.c.bf16 %v240_v6, %v239_v4  ;;  %v1039_v10 = vpack.c.bf16 %v822_v8, %v821_v7  ;;  %v823_v11 = vld [vmem:[%s214_s23 + $0x30] sm:$0xff]  ;;  %v824_v12 = vld [vmem:[%s214_s23 + $0x38] sm:$0xff] }
  0x12   : > { %886 = vmatpush3.bf16.msra.mxu1 %v1019_v1  ;;  %878 = vmatpush3.bf16.msra.mxu0 %v1019_v1  ;;  %v243_v13 = vunpack.c.l.bf16 %v241_v5  ;;  %v244_v14 = vunpack.c.h.bf16 %v241_v5  ;;  %v1042_v15 = vpack.c.bf16 %v824_v12, %v823_v11 }
  0x13   : > { %899 = vmatprep.subr.bf16.mxu1 %v1014_v0  ;;  %891 = vmatprep.subr.bf16.mxu0 %v1014_v0  ;;  %v245_v16 = vunpack.c.l.bf16 %v242_v9  ;;  %v246_v17 = vunpack.c.h.bf16 %v242_v9  ;;  %v452_v18 = vunpack.c.l.bf16 %v1039_v10  ;;  %v453_v19 = vunpack.c.h.bf16 %v1039_v10 }
  0x14   : > { %887 = vmatprep.mubr.msk.bf16.mxu1 %vm275_vm0, %v241_v5  ;;  %v247_v20 = vsub.f32 %v237_v2, %v243_v13  ;;  %v248_v21 = vsub.f32 %v238_v3, %v244_v14  ;;  %v454_v22 = vunpack.c.l.bf16 %v1042_v15  ;;  %v455_v23 = vunpack.c.h.bf16 %v1042_v15 }
  0x15   : > { %888 = vmatmul.mubr.msk.bf16.vlgmr.msra.gmra.mxu1 %vm275_vm0, %v242_v9  ;;  %v249_v24 = vsub.f32 %v239_v4, %v245_v16  ;;  %v250_v25 = vsub.f32 %v240_v6, %v246_v17  ;;  %v456_v26 = vsub.f32 %v821_v7, %v452_v18  ;;  %v457_v27 = vsub.f32 %v822_v8, %v453_v19  ;;  %v641_v18 = vld [vmem:[%s1149_s2] sm:$0xff] }
  0x16   : > { %900 = vmatpush3.bf16.msra.mxu1 %v1014_v0  ;;  %v251_v28 = vpack.c.bf16 %v248_v21, %v247_v20  ;;  %v458_v29 = vsub.f32 %v823_v11, %v454_v22  ;;  %v459_v30 = vsub.f32 %v824_v12, %v455_v23  ;;  %v643_v11 = vld [vmem:[%s1149_s2 + $0x10] sm:$0xff]  ;;  %v831_v19 = vld [vmem:[%s1149_s2 + $0x20] sm:$0xff] }
  0x17   : > { %901 = vmatprep.subr.bf16.mxu1 %v1019_v1  ;;  %v252_v31 = vpack.c.bf16 %v250_v25, %v249_v24  ;;  %v460_v32 = vpack.c.bf16 %v457_v27, %v456_v26  ;;  %v833_v12 = vld [vmem:[%s1149_s2 + $0x30] sm:$0xff] }
  0x18   : > { %v253_v33 = vunpack.c.l.bf16 %v251_v28  ;;  %v254_v34 = vunpack.c.h.bf16 %v251_v28  ;;  %879 = vmatprep.mubr.msk.bf16.mxu0 %vm275_vm0, %v251_v28  ;;  %v461_v35 = vpack.c.bf16 %v459_v30, %v458_v29 }
  0x19   : > { %v255_v36 = vunpack.c.l.bf16 %v252_v31  ;;  %v256_v37 = vunpack.c.h.bf16 %v252_v31  ;;  %880 = vmatmul.mubr.msk.bf16.vlgmr.msra.gmra.mxu0 %vm275_vm0, %v252_v31  ;;  %903 = vmatprep.mubr.msk.bf16.mxu1 %vm275_vm0, %v460_v32  ;;  %v462_v38 = vunpack.c.l.bf16 %v460_v32  ;;  %v463_v39 = vunpack.c.h.bf16 %v460_v32 }
  0x1a   : > { %902 = vmatpush3.bf16.msra.mxu1 %v1019_v1  ;;  %v257_v40 = vsub.f32 %v247_v20, %v253_v33  ;;  %v258_v41 = vsub.f32 %v248_v21, %v254_v34  ;;  %892 = vmatpush3.bf16.msra.mxu0 %v1014_v0  ;;  %v464_v42 = vunpack.c.l.bf16 %v461_v35  ;;  %v465_v43 = vunpack.c.h.bf16 %v461_v35 }
  0x1b   : > { %915 = vmatprep.subr.bf16.mxu1 %v1014_v0  ;;  %v259_v44 = vsub.f32 %v249_v24, %v255_v36  ;;  %v260_v45 = vsub.f32 %v250_v25, %v256_v37  ;;  %893 = vmatprep.subr.bf16.mxu0 %v1019_v1  ;;  %v466_v46 = vsub.f32 %v456_v26, %v462_v38  ;;  %v837_v36 = vld [vmem:[%s1149_s2 + $0x50] sm:$0xff] }
  0x1c   : > { %v261_v47 = vpack.c.bf16 %v258_v41, %v257_v40  ;;  %v467_v48 = vsub.f32 %v457_v27, %v463_v39  ;;  %v468_v49 = vsub.f32 %v458_v29, %v464_v42  ;;  %v469_v50 = vsub.f32 %v459_v30, %v465_v43  ;;  %v644_v27 = vld [vmem:[%s1149_s2 + $0x18] sm:$0xff]  ;;  %v841_v37 = vld [vmem:[%s1149_s2 + $0x70] sm:$0xff]  ;;  %v642_v40 = vld [vmem:[%s1149_s2 + $0x8] sm:$0xff] }
  0x1d   : > { %904 = vmatmul.mubr.msk.bf16.vlgmr.msra.gmra.mxu1 %vm275_vm0, %v461_v35  ;;  %v262_v51 = vpack.c.bf16 %v260_v45, %v259_v44  ;;  %v834_v39 = vld [vmem:[%s1149_s2 + $0x38] sm:$0xff] }
  0x1e   : > { %916 = vmatpush3.bf16.msra.mxu1 %v1014_v0  ;;  %894 = vmatpush3.bf16.msra.mxu0 %v1019_v1  ;;  %v470_v52 = vpack.c.bf16 %v467_v48, %v466_v46  ;;  %v471_v53 = vpack.c.bf16 %v469_v50, %v468_v49  ;;  %v832_v46 = vld [vmem:[%s1149_s2 + $0x28] sm:$0xff]  ;;  %v839_v48 = vld [vmem:[%s1149_s2 + $0x60] sm:$0xff] }
  0x1f   : > { %917 = vmatprep.subr.bf16.mxu1 %v1019_v1  ;;  %895 = vmatprep.mubr.msk.bf16.mxu0 %vm275_vm0, %v261_v47  ;;  %v835_v47 = vld [vmem:[%s1149_s2 + $0x40] sm:$0xff] }
  0x20   : > { %907 = vmatprep.subr.bf16.mxu0 %v1014_v0  ;;  %919 = vmatprep.mubr.msk.bf16.mxu1 %vm275_vm0, %v470_v52 }
  0x21   : > { %896 = vmatmul.mubr.msk.bf16.vlgmr.msra.gmra.mxu0 %vm275_vm0, %v262_v51 }
  0x22   : > { %918 = vmatpush3.bf16.msra.mxu1 %v1019_v1  ;;  %908 = vmatpush3.bf16.msra.mxu0 %v1014_v0 }
  0x23   : > { %911 = vmatprep.mubr.msk.bf16.mxu0 %vm275_vm0, %v1039_v10  ;;  %909 = vmatprep.subr.bf16.mxu0 %v1019_v1 }
  0x25   : > { %920 = vmatmul.mubr.msk.bf16.vlgmr.msra.gmra.mxu1 %vm275_vm0, %v471_v53 }
  0x26   : > { %910 = vmatpush3.bf16.msra.mxu0 %v1019_v1 }
  0x29   : > { %912 = vmatmul.mubr.msk.bf16.vlgmr.msra.gmra.mxu0 %vm275_vm0, %v1042_v15 }
  0xd5   : > { %v889_v54 = vpop.f32.mrf.mxu1 }
  0xd7   : > { %v371_v55 = vpop.f32.mrf.mxu1 }
  0xd9   : > { %v890_v56 = vpop.f32.mrf.mxu1  ;;  %v881_v57 = vpop.f32.mrf.mxu0 }
  0xda   : > { %v380_v1 = vadd.f32 %v889_v54, %v881_v57 }
  0xdb   : > { %v374_v58 = vpop.f32.mrf.mxu1  ;;  %v316_v59 = vpop.f32.mrf.mxu0 }
  0xdc   : > { %v372_v8 = vadd.f32 %v371_v55, %v316_v59 }
  0xdd   : > { %v905_v60 = vpop.f32.mrf.mxu1  ;;  %v882_v61 = vpop.f32.mrf.mxu0 }
  0xde   : > { %v383_v15 = vadd.f32 %v890_v56, %v882_v61 }
  0xdf   : > { %v512_v62 = vpop.f32.mrf.mxu1  ;;  %v319_v63 = vpop.f32.mrf.mxu0 }
  0xe0   : > { %v375_v22 = vadd.f32 %v374_v58, %v319_v63 }
  0xe1   : > { %v906_v0 = vpop.f32.mrf.mxu1  ;;  %v897_v2 = vpop.f32.mrf.mxu0 }
  0xe2   : > { %v443_v9 = vadd.f32 %v897_v2, %v380_v1  ;;  %v842_v2 = vld [vmem:[%s1149_s2 + $0x78] sm:$0xff]  ;;  %v836_v1 = vld [vmem:[%s1149_s2 + $0x48] sm:$0xff] }
  0xe3   : > { %v515_v3 = vpop.f32.mrf.mxu1  ;;  %v426_v4 = vpop.f32.mrf.mxu0 }
  0xe4   : > { %v441_v16 = vadd.f32 %v426_v4, %v372_v8  ;;  %v662_v23 = vmul.f32 %v643_v11, %v443_v9  ;;  %v682_v24 = vmul.f32 %v833_v12, %v443_v9 }
  0xe5   : > { %v898_v5 = vpop.f32.mrf.mxu0  ;;  %v921_v6 = vpop.f32.mrf.mxu1 }
  0xe6   : > { %v444_v25 = vadd.f32 %v898_v5, %v383_v15  ;;  %v660_v33 = vmul.f32 %v641_v18, %v441_v16  ;;  %v680_v34 = vmul.f32 %v831_v19, %v441_v16 }
  0xe7   : > { %v429_v7 = vpop.f32.mrf.mxu0  ;;  %v622_v13 = vpop.f32.mrf.mxu1 }
  0xe8   : > { %v442_v35 = vadd.f32 %v429_v7, %v375_v22  ;;  %v663_v45 = vmul.f32 %v644_v27, %v444_v25  ;;  %v683_v56 = vmul.f32 %v834_v39, %v444_v25  ;;  %v840_v7 = vld [vmem:[%s1149_s2 + $0x68] sm:$0xff] }
  0xe9   : > { %v913_v10 = vpop.f32.mrf.mxu0  ;;  %v922_v30 = vpop.f32.mrf.mxu1 }
  0xea   : > { %v576_v14 = vadd.f32 %v913_v10, %v905_v60  ;;  %v661_v60 = vmul.f32 %v642_v40, %v442_v35  ;;  %v681_v61 = vmul.f32 %v832_v46, %v442_v35 }
  0xeb   : > { %v567_v17 = vpop.f32.mrf.mxu0  ;;  %v625_v55 = vpop.f32.mrf.mxu1 }
  0xec   : > { %v639_v20 = vadd.f32 %v921_v6, %v576_v14  ;;  %v568_v21 = vadd.f32 %v567_v17, %v512_v62 }
  0xed   : > { %v914_v26 = vpop.f32.mrf.mxu0 }
  0xee   : > { %v666_v28 = vmul.f32 %v833_v12, %v639_v20  ;;  %v686_v29 = vmul.f32 %v643_v11, %v639_v20  ;;  %v637_v31 = vadd.f32 %v622_v13, %v568_v21  ;;  %v579_v32 = vadd.f32 %v914_v26, %v906_v0  ;;  %v838_v0 = vld [vmem:[%s1149_s2 + $0x58] sm:$0xff] }
  0xef   : > { %v570_v38 = vpop.f32.mrf.mxu0 }
  0xf0   : > { %v670_v41 = vsub.f32 %v662_v23, %v666_v28  ;;  %v690_v42 = vadd.f32 %v686_v29, %v682_v24  ;;  %v664_v43 = vmul.f32 %v831_v19, %v637_v31  ;;  %v684_v44 = vmul.f32 %v641_v18, %v637_v31 }
  0xf1   : > { %v640_v49 = vadd.f32 %v922_v30, %v579_v32  ;;  %v571_v50 = vadd.f32 %v570_v38, %v515_v3 }
  0xf2   : > { %v674_v51 = vadd.f32 %v837_v36, %v670_v41  ;;  %v694_v52 = vadd.f32 %v841_v37, %v690_v42  ;;  %v668_v53 = vsub.f32 %v660_v33, %v664_v43  ;;  %v688_v54 = vadd.f32 %v684_v44, %v680_v34 }
  0xf3   : > { %v667_v57 = vmul.f32 %v834_v39, %v640_v49  ;;  %v687_v58 = vmul.f32 %v644_v27, %v640_v49  ;;  %v638_v59 = vadd.f32 %v625_v55, %v571_v50 }
  0xf4   : > { %678 = vst [vmem:[%s1107_s22 + $0x10] sm:$0xff] %v674_v51  ;;  %845 = vst [vmem:[%s1107_s22 + $0x30] sm:$0xff] %v694_v52  ;;  %v672_v62 = vadd.f32 %v835_v47, %v668_v53  ;;  %v692_v63 = vadd.f32 %v839_v48, %v688_v54 }
  0xf5   : > { %v671_v3 = vsub.f32 %v663_v45, %v667_v57  ;;  %v691_v4 = vadd.f32 %v687_v58, %v683_v56  ;;  %v665_v5 = vmul.f32 %v832_v46, %v638_v59  ;;  %v685_v6 = vmul.f32 %v642_v40, %v638_v59 }
  0xf6   : > { %676 = vst [vmem:[%s1107_s22] sm:$0xff] %v672_v62  ;;  %843 = vst [vmem:[%s1107_s22 + $0x20] sm:$0xff] %v692_v63 }
  0xf7   : > { %v675_v8 = vadd.f32 %v838_v0, %v671_v3  ;;  %v695_v9 = vadd.f32 %v842_v2, %v691_v4  ;;  %v669_v10 = vsub.f32 %v661_v60, %v665_v5  ;;  %v689_v11 = vadd.f32 %v685_v6, %v681_v61 }
  0xf9   : > { %679 = vst [vmem:[%s1107_s22 + $0x18] sm:$0xff] %v675_v8  ;;  %846 = vst [vmem:[%s1107_s22 + $0x38] sm:$0xff] %v695_v9  ;;  %v673_v12 = vadd.f32 %v836_v1, %v669_v10  ;;  %v693_v13 = vadd.f32 %v840_v7, %v689_v11 }
  0xfb   : > { %677 = vst [vmem:[%s1107_s22 + $0x8] sm:$0xff] %v673_v12  ;;  %844 = vst [vmem:[%s1107_s22 + $0x28] sm:$0xff] %v693_v13 }
  0xfc PF: > { %s13_s14 = sadd.s32 1, %s971_s14   ;;  %s1151_s12 = smov %s967_s13 }
  0xfd   : > { %p10_p5 = scmp.ge.s32.totalorder %s13_s14, 4   ;;  %s1152_s13 = smov %s1154_s15 }
  0xff   :  { %12 = sbr.rel (!%p10_p5) target bundleno = 2 (0x2), region = 70 }

</bundles_post_ra>
